<compile_context>
chip_gen: v7x
topology: tpu7x:2x2x1
jax: 0.10.0
libtpu: 0.0.40
codegen_flags: <defaults>
</compile_context>

<pallas_src>
import jax
import jax.numpy as jnp
from jax.experimental import pallas as pl
from jax.experimental.pallas import tpu as pltpu

# ----------------------------------------------------------------------------
# Problem sizes (small, consistent with the forward's data flow)
# ----------------------------------------------------------------------------
B = 2      # batch
D = 16     # number of feed components (c620_feed / t651_feed width)
CASE = 4   # operating-condition ("case") features
H = 32     # MLP hidden width
OP = 8     # operating-variable output width

SF4 = 4 * D            # 64  (c620 / c660 split-factor width)
SF2 = 2 * D            # 32  (c670 split-factor width)

# Packed-output lane layout of the single [B, OUT_W] result slab.
_OFF_C620_OP = 0
_OFF_C620_W = _OFF_C620_OP + OP        # 8   : c620_w1..w4 (4 x D)
_OFF_C660_OP = _OFF_C620_W + SF4       # 72
_OFF_C660_W = _OFF_C660_OP + OP        # 80  : c660_w1..w4 (4 x D)
_OFF_C670_OP = _OFF_C660_W + SF4       # 144
_OFF_C670_W = _OFF_C670_OP + OP        # 152 : c670_w1..w2 (2 x D)
_OUT_USED = _OFF_C670_W + SF2          # 184
OUT_W = 256                            # pad to a lane-dense multiple of 128

_VMEM = pl.BlockSpec(memory_space=pltpu.MemorySpace.VMEM)


# ----------------------------------------------------------------------------
# Fused kernel
# ----------------------------------------------------------------------------
def _sigmoid(y):
    # EUP exp + approximate reciprocal (EUP slot) instead of exact VALU divide.
    return pl.reciprocal(1.0 + jnp.exp(-y), approx=True)


def _fused_column(xa, w1a, xb, w1b, b1, w2, b2):
    """Fused OP+SF two-layer MLP for one column.

    Layer-1 weights of the OP and SF heads are concatenated along the output
    dim; layer-2 is block-diagonal, so a single pair of matmuls evaluates
    both heads.  The input concat [xa, xb] is replaced by a split matmul so
    no lane concatenation is needed.  Returns the raw [B, OP + sf_width]
    pre-activation result (caller splits OP / sigmoid(SF)).
    """
    h = jnp.dot(xa, w1a, preferred_element_type=jnp.float32)
    h = h + jnp.dot(xb, w1b, preferred_element_type=jnp.float32)
    h = jnp.maximum(h + b1, 0.0)
    return jnp.dot(h, w2, preferred_element_type=jnp.float32) + b2


def _model_kernel(
    # raw inputs
    c620_case_ref, c620_feed_ref, t651_feed_ref, c660_case_ref,
    # c620 fused OP+SF
    w1c_620_ref, w1f_620_ref, b1_620_ref, w2_620_ref, b2_620_ref,
    # c660 mixing-fraction MLP (C660_MF)
    w1a_mf_ref, w1b_mf_ref, b1_mf_ref, w2_mf_ref, b2_mf_ref,
    # c660 fused OP+SF
    w1c_660_ref, w1f_660_ref, b1_660_ref, w2_660_ref, b2_660_ref,
    # c670 fused OP+SF
    w1a_670_ref, w1b_670_ref, b1_670_ref, w2_670_ref, b2_670_ref,
    # packed output slab
    out_ref,
):
    c620_case = c620_case_ref[...]
    c620_feed = c620_feed_ref[...]
    t651_feed = t651_feed_ref[...]
    c660_case = c660_case_ref[...]

    # ---- C620: fused OP+SF heads, then material balance (TR_C620) ----------
    y620 = _fused_column(c620_case, w1c_620_ref[...], c620_feed, w1f_620_ref[...],
                         b1_620_ref[...], w2_620_ref[...], b2_620_ref[...])
    c620_op = y620[:, :OP]                               # [B, OP]   (linear)
    sf620 = _sigmoid(y620[:, OP:])                       # [B, 4D]   (sigmoid)
    feed4_620 = jnp.concatenate([c620_feed] * 4, axis=-1)  # lane-dense tile
    w620 = sf620 * feed4_620                             # TR_C620, packed [B, 4D]
    c620_w3 = w620[:, 2 * D:3 * D]
    c620_w4 = w620[:, 3 * D:4 * D]

    # ---- C660_MF + TR_C620_T651 (feed blend) --------------------------------
    hmf = jnp.dot(t651_feed, w1a_mf_ref[...], preferred_element_type=jnp.float32)
    hmf = hmf + jnp.dot(c620_w3, w1b_mf_ref[...], preferred_element_type=jnp.float32)
    hmf = jnp.maximum(hmf + b1_mf_ref[...], 0.0)
    m = _sigmoid(jnp.dot(hmf, w2_mf_ref[...], preferred_element_type=jnp.float32)
                 + b2_mf_ref[...])                       # [B, 2]
    m_c620 = m[:, 0:1]
    m_t651 = m[:, 1:2]
    # NOTE: original module print()s shapes here; intentionally omitted so the
    # script prints only KERNEL_OK.
    c660_feed = m_c620 * c620_w3 + m_t651 * t651_feed    # TR_C620_T651

    # ---- C660 ----------------------------------------------------------------
    y660 = _fused_column(c660_case, w1c_660_ref[...], c660_feed, w1f_660_ref[...],
                         b1_660_ref[...], w2_660_ref[...], b2_660_ref[...])
    c660_op = y660[:, :OP]
    sf660 = _sigmoid(y660[:, OP:])
    feed4_660 = jnp.concatenate([c660_feed] * 4, axis=-1)
    w660 = sf660 * feed4_660                             # TR_C660, packed [B, 4D]
    c660_w4 = w660[:, 3 * D:4 * D]

    # ---- C670 ----------------------------------------------------------------
    y670 = _fused_column(c620_w4, w1a_670_ref[...], c660_w4, w1b_670_ref[...],
                         b1_670_ref[...], w2_670_ref[...], b2_670_ref[...])
    c670_op = y670[:, :OP]
    sf670 = _sigmoid(y670[:, OP:])
    feed670 = c620_w4 + c660_w4
    w670 = sf670 * jnp.concatenate([feed670] * 2, axis=-1)  # TR_C670, [B, 2D]

    # ---- single lane-dense packed store --------------------------------------
    pad = jnp.zeros((c620_op.shape[0], OUT_W - _OUT_USED), jnp.float32)
    out_ref[...] = jnp.concatenate(
        [c620_op, w620, c660_op, w660, c670_op, w670, pad], axis=-1)


# ----------------------------------------------------------------------------
# Wrapper: one pallas_call + wrapper-side slicing of the packed slab
# ----------------------------------------------------------------------------
@jax.jit
def model_forward(fused, c620_case, c620_feed, t651_feed, c660_case):
    args = (
        c620_case, c620_feed, t651_feed, c660_case,
        *fused["c620"], *fused["c660_mf"], *fused["c660"], *fused["c670"],
    )
    slab = pl.pallas_call(
        _model_kernel,
        out_shape=jax.ShapeDtypeStruct((c620_case.shape[0], OUT_W), jnp.float32),
        in_specs=[_VMEM] * len(args),
        out_specs=_VMEM,
    )(*args)

    def sl(off, width):
        return slab[:, off:off + width]

    c620_op = sl(_OFF_C620_OP, OP)
    c620_w = [sl(_OFF_C620_W + i * D, D) for i in range(4)]
    c660_op = sl(_OFF_C660_OP, OP)
    c660_w = [sl(_OFF_C660_W + i * D, D) for i in range(4)]
    c670_op = sl(_OFF_C670_OP, OP)
    c670_w = [sl(_OFF_C670_W + i * D, D) for i in range(2)]
    return (c620_op, *c620_w, c660_op, *c660_w, c670_op, *c670_w)


# ----------------------------------------------------------------------------
# Deterministic parameter construction + one-time weight fusion
# ----------------------------------------------------------------------------
def _make_mlp_params(key, d_in, d_hidden, d_out):
    k1, k2 = jax.random.split(key)
    w1 = jax.random.normal(k1, (d_in, d_hidden), jnp.float32) / jnp.sqrt(d_in)
    b1 = jnp.zeros((1, d_hidden), jnp.float32)
    w2 = jax.random.normal(k2, (d_hidden, d_out), jnp.float32) / jnp.sqrt(d_hidden)
    b2 = jnp.zeros((1, d_out), jnp.float32)
    return (w1, b1, w2, b2)


def init_params(key):
    keys = jax.random.split(key, 7)
    return {
        "c620_op": _make_mlp_params(keys[0], CASE + D, H, OP),
        "c620_sf": _make_mlp_params(keys[1], CASE + D, H, 4 * D),
        "c660_mf": _make_mlp_params(keys[2], 2 * D, H, 2),
        "c660_op": _make_mlp_params(keys[3], CASE + D, H, OP),
        "c660_sf": _make_mlp_params(keys[4], CASE + D, H, 4 * D),
        "c670_op": _make_mlp_params(keys[5], 2 * D, H, OP),
        "c670_sf": _make_mlp_params(keys[6], 2 * D, H, 2 * D),
    }


def _block_diag(a, b):
    m, p = a.shape
    n, q = b.shape
    top = jnp.concatenate([a, jnp.zeros((m, q), a.dtype)], axis=1)
    bot = jnp.concatenate([jnp.zeros((n, p), b.dtype), b], axis=1)
    return jnp.concatenate([top, bot], axis=0)


def _fuse_column(op_p, sf_p, split):
    """Fuse a column's OP+SF MLPs.  W1 rows split at `split` (input concat point)."""
    w1o, b1o, w2o, b2o = op_p
    w1s, b1s, w2s, b2s = sf_p
    w1 = jnp.concatenate([w1o, w1s], axis=1)    # [d_in, 2H]
    b1 = jnp.concatenate([b1o, b1s], axis=1)    # [1, 2H]
    w2 = _block_diag(w2o, w2s)                  # [2H, OP + sf_out]
    b2 = jnp.concatenate([b2o, b2s], axis=1)    # [1, OP + sf_out]
    return (w1[:split], w1[split:], b1, w2, b2)


def fuse_params(params):
    mf_w1, mf_b1, mf_w2, mf_b2 = params["c660_mf"]
    return {
        "c620": _fuse_column(params["c620_op"], params["c620_sf"], CASE),
        "c660_mf": (mf_w1[:D], mf_w1[D:], mf_b1, mf_w2, mf_b2),
        "c660": _fuse_column(params["c660_op"], params["c660_sf"], CASE),
        "c670": _fuse_column(params["c670_op"], params["c670_sf"], D),
    }


# ----------------------------------------------------------------------------
# Pure-JAX reference of the original (unfused) forward, for verification
# ----------------------------------------------------------------------------
def _mlp_ref(x, p, act="linear"):
    w1, b1, w2, b2 = p
    h = jnp.maximum(x @ w1 + b1, 0.0)
    y = h @ w2 + b2
    return jax.nn.sigmoid(y) if act == "sigmoid" else y


def reference_forward(params, c620_case, c620_feed, t651_feed, c660_case):
    x620 = jnp.concatenate([c620_case, c620_feed], axis=-1)
    c620_op = _mlp_ref(x620, params["c620_op"])
    s620 = _mlp_ref(x620, params["c620_sf"], "sigmoid")
    c620_w = [c620_feed * s620[:, i * D:(i + 1) * D] for i in range(4)]

    xmf = jnp.concatenate([t651_feed, c620_w[2]], axis=-1)
    m = _mlp_ref(xmf, params["c660_mf"], "sigmoid")
    c660_feed = m[:, 0:1] * c620_w[2] + m[:, 1:2] * t651_feed

    x660 = jnp.concatenate([c660_case, c660_feed], axis=-1)
    c660_op = _mlp_ref(x660, params["c660_op"])
    s660 = _mlp_ref(x660, params["c660_sf"], "sigmoid")
    c660_w = [c660_feed * s660[:, i * D:(i + 1) * D] for i in range(4)]

    x670 = jnp.concatenate([c620_w[3], c660_w[3]], axis=-1)
    c670_op = _mlp_ref(x670, params["c670_op"])
    s670 = _mlp_ref(x670, params["c670_sf"], "sigmoid")
    f670 = c620_w[3] + c660_w[3]
    c670_w = [f670 * s670[:, i * D:(i + 1) * D] for i in range(2)]

    return (c620_op, *c620_w, c660_op, *c660_w, c670_op, *c670_w)


# ----------------------------------------------------------------------------
if __name__ == "__main__":
    key = jax.random.PRNGKey(0)
    k_params, k1, k2, k3, k4 = jax.random.split(key, 5)

    params = init_params(k_params)
    fused = fuse_params(params)

    c620_case = jax.random.uniform(k1, (B, CASE), jnp.float32)
    c620_feed = jax.random.uniform(k2, (B, D), jnp.float32)
    t651_feed = jax.random.uniform(k3, (B, D), jnp.float32)
    c660_case = jax.random.uniform(k4, (B, CASE), jnp.float32)

    outs = model_forward(fused, c620_case, c620_feed, t651_feed, c660_case)
    outs = jax.block_until_ready(outs)

    refs = reference_forward(params, c620_case, c620_feed, t651_feed, c660_case)

    # Sanity: 13 outputs, all finite, matching the unfused reference
    # (loose tolerance covers the approx-reciprocal sigmoid path).
    assert len(outs) == 13
    for o, r in zip(outs, refs):
        assert o.shape == r.shape
        assert bool(jnp.all(jnp.isfinite(o)))
        assert bool(jnp.allclose(o, r, rtol=1e-2, atol=1e-2)), (
            float(jnp.max(jnp.abs(o - r))))

    print("KERNEL_OK")
</pallas_src>

<mosaic_0001>
module attributes {stable_mosaic.version = 11 : i64} {
  func.func @_model_kernel(%arg0: memref<2x4xf32, #tpu.memory_space<vmem>>, %arg1: memref<2x16xf32, #tpu.memory_space<vmem>>, %arg2: memref<2x16xf32, #tpu.memory_space<vmem>>, %arg3: memref<2x4xf32, #tpu.memory_space<vmem>>, %arg4: memref<4x64xf32, #tpu.memory_space<vmem>>, %arg5: memref<16x64xf32, #tpu.memory_space<vmem>>, %arg6: memref<1x64xf32, #tpu.memory_space<vmem>>, %arg7: memref<64x72xf32, #tpu.memory_space<vmem>>, %arg8: memref<1x72xf32, #tpu.memory_space<vmem>>, %arg9: memref<16x32xf32, #tpu.memory_space<vmem>>, %arg10: memref<16x32xf32, #tpu.memory_space<vmem>>, %arg11: memref<1x32xf32, #tpu.memory_space<vmem>>, %arg12: memref<32x2xf32, #tpu.memory_space<vmem>>, %arg13: memref<1x2xf32, #tpu.memory_space<vmem>>, %arg14: memref<4x64xf32, #tpu.memory_space<vmem>>, %arg15: memref<16x64xf32, #tpu.memory_space<vmem>>, %arg16: memref<1x64xf32, #tpu.memory_space<vmem>>, %arg17: memref<64x72xf32, #tpu.memory_space<vmem>>, %arg18: memref<1x72xf32, #tpu.memory_space<vmem>>, %arg19: memref<16x64xf32, #tpu.memory_space<vmem>>, %arg20: memref<16x64xf32, #tpu.memory_space<vmem>>, %arg21: memref<1x64xf32, #tpu.memory_space<vmem>>, %arg22: memref<64x40xf32, #tpu.memory_space<vmem>>, %arg23: memref<1x40xf32, #tpu.memory_space<vmem>>, %arg24: memref<2x256xf32, #tpu.memory_space<vmem>>) attributes {dimension_semantics = [], scalar_prefetch = 0 : i64, scratch_operands = 0 : i64, tpu.core_type = #tpu.core_type<tc>} {
    %c0 = arith.constant 0 : index
    %c0_0 = arith.constant 0 : index
    %0 = vector.load %arg0[%c0, %c0_0] : memref<2x4xf32, #tpu.memory_space<vmem>>, vector<2x4xf32>
    %c0_1 = arith.constant 0 : index
    %c0_2 = arith.constant 0 : index
    %1 = vector.load %arg1[%c0_1, %c0_2] : memref<2x16xf32, #tpu.memory_space<vmem>>, vector<2x16xf32>
    %c0_3 = arith.constant 0 : index
    %c0_4 = arith.constant 0 : index
    %2 = vector.load %arg2[%c0_3, %c0_4] : memref<2x16xf32, #tpu.memory_space<vmem>>, vector<2x16xf32>
    %c0_5 = arith.constant 0 : index
    %c0_6 = arith.constant 0 : index
    %3 = vector.load %arg3[%c0_5, %c0_6] : memref<2x4xf32, #tpu.memory_space<vmem>>, vector<2x4xf32>
    %c0_7 = arith.constant 0 : index
    %c0_8 = arith.constant 0 : index
    %4 = vector.load %arg4[%c0_7, %c0_8] : memref<4x64xf32, #tpu.memory_space<vmem>>, vector<4x64xf32>
    %c0_9 = arith.constant 0 : index
    %c0_10 = arith.constant 0 : index
    %5 = vector.load %arg5[%c0_9, %c0_10] : memref<16x64xf32, #tpu.memory_space<vmem>>, vector<16x64xf32>
    %c0_11 = arith.constant 0 : index
    %c0_12 = arith.constant 0 : index
    %6 = vector.load %arg6[%c0_11, %c0_12] : memref<1x64xf32, #tpu.memory_space<vmem>>, vector<1x64xf32>
    %c0_13 = arith.constant 0 : index
    %c0_14 = arith.constant 0 : index
    %7 = vector.load %arg7[%c0_13, %c0_14] : memref<64x72xf32, #tpu.memory_space<vmem>>, vector<64x72xf32>
    %c0_15 = arith.constant 0 : index
    %c0_16 = arith.constant 0 : index
    %8 = vector.load %arg8[%c0_15, %c0_16] : memref<1x72xf32, #tpu.memory_space<vmem>>, vector<1x72xf32>
    %cst = arith.constant dense<0.000000e+00> : vector<2x64xf32>
    %9 = tpu.matmul %0, %4, %cst {dimension_numbers = #tpu.dot_dimension_numbers<[1], [0], [0], [1], [0, 0, 1, 1], [], []>} : vector<2x4xf32>, vector<4x64xf32>, vector<2x64xf32> -> vector<2x64xf32>
    %cst_17 = arith.constant dense<0.000000e+00> : vector<2x64xf32>
    %10 = tpu.matmul %1, %5, %cst_17 {dimension_numbers = #tpu.dot_dimension_numbers<[1], [0], [0], [1], [0, 0, 1, 1], [], []>} : vector<2x16xf32>, vector<16x64xf32>, vector<2x64xf32> -> vector<2x64xf32>
    %11 = arith.addf %9, %10 : vector<2x64xf32>
    %12 = vector.broadcast %6 : vector<1x64xf32> to vector<2x64xf32>
    %13 = arith.addf %11, %12 : vector<2x64xf32>
    %cst_18 = arith.constant 0.000000e+00 : f32
    %14 = vector.broadcast %cst_18 : f32 to vector<2x64xf32>
    %15 = arith.maximumf %13, %14 : vector<2x64xf32>
    %cst_19 = arith.constant dense<0.000000e+00> : vector<2x72xf32>
    %16 = tpu.matmul %15, %7, %cst_19 {dimension_numbers = #tpu.dot_dimension_numbers<[1], [0], [0], [1], [0, 0, 1, 1], [], []>} : vector<2x64xf32>, vector<64x72xf32>, vector<2x72xf32> -> vector<2x72xf32>
    %17 = vector.broadcast %8 : vector<1x72xf32> to vector<2x72xf32>
    %18 = arith.addf %16, %17 : vector<2x72xf32>
    %19 = vector.extract_strided_slice %18 {offsets = [0, 0], sizes = [2, 8], strides = [1, 1]} : vector<2x72xf32> to vector<2x8xf32>
    %20 = vector.extract_strided_slice %18 {offsets = [0, 8], sizes = [2, 64], strides = [1, 1]} : vector<2x72xf32> to vector<2x64xf32>
    %cst_20 = arith.constant 0.000000e+00 : f32
    %21 = vector.broadcast %cst_20 : f32 to vector<2x64xf32>
    %22 = arith.subf %21, %20 : vector<2x64xf32>
    %23 = math.exp %22 : vector<2x64xf32>
    %cst_21 = arith.constant 1.000000e+00 : f32
    %24 = vector.broadcast %cst_21 : f32 to vector<2x64xf32>
    %25 = arith.addf %24, %23 : vector<2x64xf32>
    %26 = tpu.reciprocal %25 {approx = true} : vector<2x64xf32> -> vector<2x64xf32>
    %27 = tpu.concatenate %1, %1, %1, %1 in 1 : vector<2x16xf32>, vector<2x16xf32>, vector<2x16xf32>, vector<2x16xf32> -> vector<2x64xf32>
    %28 = arith.mulf %26, %27 : vector<2x64xf32>
    %29 = vector.extract_strided_slice %28 {offsets = [0, 32], sizes = [2, 16], strides = [1, 1]} : vector<2x64xf32> to vector<2x16xf32>
    %30 = vector.extract_strided_slice %28 {offsets = [0, 48], sizes = [2, 16], strides = [1, 1]} : vector<2x64xf32> to vector<2x16xf32>
    %c0_22 = arith.constant 0 : index
    %c0_23 = arith.constant 0 : index
    %31 = vector.load %arg9[%c0_22, %c0_23] : memref<16x32xf32, #tpu.memory_space<vmem>>, vector<16x32xf32>
    %cst_24 = arith.constant dense<0.000000e+00> : vector<2x32xf32>
    %32 = tpu.matmul %2, %31, %cst_24 {dimension_numbers = #tpu.dot_dimension_numbers<[1], [0], [0], [1], [0, 0, 1, 1], [], []>} : vector<2x16xf32>, vector<16x32xf32>, vector<2x32xf32> -> vector<2x32xf32>
    %c0_25 = arith.constant 0 : index
    %c0_26 = arith.constant 0 : index
    %33 = vector.load %arg10[%c0_25, %c0_26] : memref<16x32xf32, #tpu.memory_space<vmem>>, vector<16x32xf32>
    %cst_27 = arith.constant dense<0.000000e+00> : vector<2x32xf32>
    %34 = tpu.matmul %29, %33, %cst_27 {dimension_numbers = #tpu.dot_dimension_numbers<[1], [0], [0], [1], [0, 0, 1, 1], [], []>} : vector<2x16xf32>, vector<16x32xf32>, vector<2x32xf32> -> vector<2x32xf32>
    %35 = arith.addf %32, %34 : vector<2x32xf32>
    %c0_28 = arith.constant 0 : index
    %c0_29 = arith.constant 0 : index
    %36 = vector.load %arg11[%c0_28, %c0_29] : memref<1x32xf32, #tpu.memory_space<vmem>>, vector<1x32xf32>
    %37 = vector.broadcast %36 : vector<1x32xf32> to vector<2x32xf32>
    %38 = arith.addf %35, %37 : vector<2x32xf32>
    %cst_30 = arith.constant 0.000000e+00 : f32
    %39 = vector.broadcast %cst_30 : f32 to vector<2x32xf32>
    %40 = arith.maximumf %38, %39 : vector<2x32xf32>
    %c0_31 = arith.constant 0 : index
    %c0_32 = arith.constant 0 : index
    %41 = vector.load %arg12[%c0_31, %c0_32] : memref<32x2xf32, #tpu.memory_space<vmem>>, vector<32x2xf32>
    %cst_33 = arith.constant dense<0.000000e+00> : vector<2x2xf32>
    %42 = tpu.matmul %40, %41, %cst_33 {dimension_numbers = #tpu.dot_dimension_numbers<[1], [0], [0], [1], [0, 0, 1, 1], [], []>} : vector<2x32xf32>, vector<32x2xf32>, vector<2x2xf32> -> vector<2x2xf32>
    %c0_34 = arith.constant 0 : index
    %c0_35 = arith.constant 0 : index
    %43 = vector.load %arg13[%c0_34, %c0_35] : memref<1x2xf32, #tpu.memory_space<vmem>>, vector<1x2xf32>
    %44 = vector.broadcast %43 : vector<1x2xf32> to vector<2x2xf32>
    %45 = arith.addf %42, %44 : vector<2x2xf32>
    %cst_36 = arith.constant 0.000000e+00 : f32
    %46 = vector.broadcast %cst_36 : f32 to vector<2x2xf32>
    %47 = arith.subf %46, %45 : vector<2x2xf32>
    %48 = math.exp %47 : vector<2x2xf32>
    %cst_37 = arith.constant 1.000000e+00 : f32
    %49 = vector.broadcast %cst_37 : f32 to vector<2x2xf32>
    %50 = arith.addf %49, %48 : vector<2x2xf32>
    %51 = tpu.reciprocal %50 {approx = true} : vector<2x2xf32> -> vector<2x2xf32>
    %52 = vector.extract_strided_slice %51 {offsets = [0, 0], sizes = [2, 1], strides = [1, 1]} : vector<2x2xf32> to vector<2x1xf32>
    %53 = vector.extract_strided_slice %51 {offsets = [0, 1], sizes = [2, 1], strides = [1, 1]} : vector<2x2xf32> to vector<2x1xf32>
    %54 = vector.broadcast %52 : vector<2x1xf32> to vector<2x16xf32>
    %55 = arith.mulf %54, %29 : vector<2x16xf32>
    %56 = vector.broadcast %53 : vector<2x1xf32> to vector<2x16xf32>
    %57 = arith.mulf %56, %2 : vector<2x16xf32>
    %58 = arith.addf %55, %57 : vector<2x16xf32>
    %c0_38 = arith.constant 0 : index
    %c0_39 = arith.constant 0 : index
    %59 = vector.load %arg14[%c0_38, %c0_39] : memref<4x64xf32, #tpu.memory_space<vmem>>, vector<4x64xf32>
    %c0_40 = arith.constant 0 : index
    %c0_41 = arith.constant 0 : index
    %60 = vector.load %arg15[%c0_40, %c0_41] : memref<16x64xf32, #tpu.memory_space<vmem>>, vector<16x64xf32>
    %c0_42 = arith.constant 0 : index
    %c0_43 = arith.constant 0 : index
    %61 = vector.load %arg16[%c0_42, %c0_43] : memref<1x64xf32, #tpu.memory_space<vmem>>, vector<1x64xf32>
    %c0_44 = arith.constant 0 : index
    %c0_45 = arith.constant 0 : index
    %62 = vector.load %arg17[%c0_44, %c0_45] : memref<64x72xf32, #tpu.memory_space<vmem>>, vector<64x72xf32>
    %c0_46 = arith.constant 0 : index
    %c0_47 = arith.constant 0 : index
    %63 = vector.load %arg18[%c0_46, %c0_47] : memref<1x72xf32, #tpu.memory_space<vmem>>, vector<1x72xf32>
    %cst_48 = arith.constant dense<0.000000e+00> : vector<2x64xf32>
    %64 = tpu.matmul %3, %59, %cst_48 {dimension_numbers = #tpu.dot_dimension_numbers<[1], [0], [0], [1], [0, 0, 1, 1], [], []>} : vector<2x4xf32>, vector<4x64xf32>, vector<2x64xf32> -> vector<2x64xf32>
    %cst_49 = arith.constant dense<0.000000e+00> : vector<2x64xf32>
    %65 = tpu.matmul %58, %60, %cst_49 {dimension_numbers = #tpu.dot_dimension_numbers<[1], [0], [0], [1], [0, 0, 1, 1], [], []>} : vector<2x16xf32>, vector<16x64xf32>, vector<2x64xf32> -> vector<2x64xf32>
    %66 = arith.addf %64, %65 : vector<2x64xf32>
    %67 = vector.broadcast %61 : vector<1x64xf32> to vector<2x64xf32>
    %68 = arith.addf %66, %67 : vector<2x64xf32>
    %cst_50 = arith.constant 0.000000e+00 : f32
    %69 = vector.broadcast %cst_50 : f32 to vector<2x64xf32>
    %70 = arith.maximumf %68, %69 : vector<2x64xf32>
    %cst_51 = arith.constant dense<0.000000e+00> : vector<2x72xf32>
    %71 = tpu.matmul %70, %62, %cst_51 {dimension_numbers = #tpu.dot_dimension_numbers<[1], [0], [0], [1], [0, 0, 1, 1], [], []>} : vector<2x64xf32>, vector<64x72xf32>, vector<2x72xf32> -> vector<2x72xf32>
    %72 = vector.broadcast %63 : vector<1x72xf32> to vector<2x72xf32>
    %73 = arith.addf %71, %72 : vector<2x72xf32>
    %74 = vector.extract_strided_slice %73 {offsets = [0, 0], sizes = [2, 8], strides = [1, 1]} : vector<2x72xf32> to vector<2x8xf32>
    %75 = vector.extract_strided_slice %73 {offsets = [0, 8], sizes = [2, 64], strides = [1, 1]} : vector<2x72xf32> to vector<2x64xf32>
    %cst_52 = arith.constant 0.000000e+00 : f32
    %76 = vector.broadcast %cst_52 : f32 to vector<2x64xf32>
    %77 = arith.subf %76, %75 : vector<2x64xf32>
    %78 = math.exp %77 : vector<2x64xf32>
    %cst_53 = arith.constant 1.000000e+00 : f32
    %79 = vector.broadcast %cst_53 : f32 to vector<2x64xf32>
    %80 = arith.addf %79, %78 : vector<2x64xf32>
    %81 = tpu.reciprocal %80 {approx = true} : vector<2x64xf32> -> vector<2x64xf32>
    %82 = tpu.concatenate %58, %58, %58, %58 in 1 : vector<2x16xf32>, vector<2x16xf32>, vector<2x16xf32>, vector<2x16xf32> -> vector<2x64xf32>
    %83 = arith.mulf %81, %82 : vector<2x64xf32>
    %84 = vector.extract_strided_slice %83 {offsets = [0, 48], sizes = [2, 16], strides = [1, 1]} : vector<2x64xf32> to vector<2x16xf32>
    %c0_54 = arith.constant 0 : index
    %c0_55 = arith.constant 0 : index
    %85 = vector.load %arg19[%c0_54, %c0_55] : memref<16x64xf32, #tpu.memory_space<vmem>>, vector<16x64xf32>
    %c0_56 = arith.constant 0 : index
    %c0_57 = arith.constant 0 : index
    %86 = vector.load %arg20[%c0_56, %c0_57] : memref<16x64xf32, #tpu.memory_space<vmem>>, vector<16x64xf32>
    %c0_58 = arith.constant 0 : index
    %c0_59 = arith.constant 0 : index
    %87 = vector.load %arg21[%c0_58, %c0_59] : memref<1x64xf32, #tpu.memory_space<vmem>>, vector<1x64xf32>
    %c0_60 = arith.constant 0 : index
    %c0_61 = arith.constant 0 : index
    %88 = vector.load %arg22[%c0_60, %c0_61] : memref<64x40xf32, #tpu.memory_space<vmem>>, vector<64x40xf32>
    %c0_62 = arith.constant 0 : index
    %c0_63 = arith.constant 0 : index
    %89 = vector.load %arg23[%c0_62, %c0_63] : memref<1x40xf32, #tpu.memory_space<vmem>>, vector<1x40xf32>
    %cst_64 = arith.constant dense<0.000000e+00> : vector<2x64xf32>
    %90 = tpu.matmul %30, %85, %cst_64 {dimension_numbers = #tpu.dot_dimension_numbers<[1], [0], [0], [1], [0, 0, 1, 1], [], []>} : vector<2x16xf32>, vector<16x64xf32>, vector<2x64xf32> -> vector<2x64xf32>
    %cst_65 = arith.constant dense<0.000000e+00> : vector<2x64xf32>
    %91 = tpu.matmul %84, %86, %cst_65 {dimension_numbers = #tpu.dot_dimension_numbers<[1], [0], [0], [1], [0, 0, 1, 1], [], []>} : vector<2x16xf32>, vector<16x64xf32>, vector<2x64xf32> -> vector<2x64xf32>
    %92 = arith.addf %90, %91 : vector<2x64xf32>
    %93 = vector.broadcast %87 : vector<1x64xf32> to vector<2x64xf32>
    %94 = arith.addf %92, %93 : vector<2x64xf32>
    %cst_66 = arith.constant 0.000000e+00 : f32
    %95 = vector.broadcast %cst_66 : f32 to vector<2x64xf32>
    %96 = arith.maximumf %94, %95 : vector<2x64xf32>
    %cst_67 = arith.constant dense<0.000000e+00> : vector<2x40xf32>
    %97 = tpu.matmul %96, %88, %cst_67 {dimension_numbers = #tpu.dot_dimension_numbers<[1], [0], [0], [1], [0, 0, 1, 1], [], []>} : vector<2x64xf32>, vector<64x40xf32>, vector<2x40xf32> -> vector<2x40xf32>
    %98 = vector.broadcast %89 : vector<1x40xf32> to vector<2x40xf32>
    %99 = arith.addf %97, %98 : vector<2x40xf32>
    %100 = vector.extract_strided_slice %99 {offsets = [0, 0], sizes = [2, 8], strides = [1, 1]} : vector<2x40xf32> to vector<2x8xf32>
    %101 = vector.extract_strided_slice %99 {offsets = [0, 8], sizes = [2, 32], strides = [1, 1]} : vector<2x40xf32> to vector<2x32xf32>
    %cst_68 = arith.constant 0.000000e+00 : f32
    %102 = vector.broadcast %cst_68 : f32 to vector<2x32xf32>
    %103 = arith.subf %102, %101 : vector<2x32xf32>
    %104 = math.exp %103 : vector<2x32xf32>
    %cst_69 = arith.constant 1.000000e+00 : f32
    %105 = vector.broadcast %cst_69 : f32 to vector<2x32xf32>
    %106 = arith.addf %105, %104 : vector<2x32xf32>
    %107 = tpu.reciprocal %106 {approx = true} : vector<2x32xf32> -> vector<2x32xf32>
    %108 = arith.addf %30, %84 : vector<2x16xf32>
    %109 = tpu.concatenate %108, %108 in 1 : vector<2x16xf32>, vector<2x16xf32> -> vector<2x32xf32>
    %110 = arith.mulf %107, %109 : vector<2x32xf32>
    %cst_70 = arith.constant 0.000000e+00 : f32
    %111 = vector.broadcast %cst_70 : f32 to vector<2x72xf32>
    %112 = tpu.concatenate %19, %28, %74, %83, %100, %110, %111 in 1 : vector<2x8xf32>, vector<2x64xf32>, vector<2x8xf32>, vector<2x64xf32>, vector<2x8xf32>, vector<2x32xf32>, vector<2x72xf32> -> vector<2x256xf32>
    %c0_71 = arith.constant 0 : index
    %c0_72 = arith.constant 0 : index
    %113 = vector.load %arg24[%c0_71, %c0_72] : memref<2x256xf32, #tpu.memory_space<vmem>>, vector<2x256xf32>
    tpu.vector_store %arg24[%c0_71, %c0_72], %112 {strides = array<i32>} : memref<2x256xf32, #tpu.memory_space<vmem>>, vector<2x256xf32>,
    return
  }
}

</mosaic_0001>

<bundles_post_ra>
// kernel: model_forward.1
= control target key start
LH: loop header
LB: loop body
LE: loop exit
PB: predicated region body
PF: predicated region fallthrough
CT: control target
= control target key end

     0   :  { %s2467_s0 = inlined_call_operand.vmem [shape: f32[2,4], index: 0, kind: input, shape index: {}]   ;;  %s2468_s1 = inlined_call_operand.vmem [shape: f32[2,16], index: 1, kind: input, shape index: {}]   ;;  %s2469_s2 = inlined_call_operand.vmem [shape: f32[2,16], index: 2, kind: input, shape index: {}]   ;;  %s2470_s3 = inlined_call_operand.vmem [shape: f32[2,4], index: 3, kind: input, shape index: {}]   ;;  %s2471_s4 = inlined_call_operand.hbm [shape: f32[4,64], index: 4, kind: input, shape index: {}]   ;;  %s2472_s5 = inlined_call_operand.hbm [shape: f32[16,64], index: 5, kind: input, shape index: {}]   ;;  %s2473_s6 = inlined_call_operand.vmem [shape: f32[1,64], index: 6, kind: input, shape index: {}]   ;;  %s2474_s7 = inlined_call_operand.vmem [shape: f32[64,72], index: 7, kind: input, shape index: {}]   ;;  %s2475_s8 = inlined_call_operand.hbm [shape: f32[1,72], index: 8, kind: input, shape index: {}]   ;;  %s2476_s9 = inlined_call_operand.hbm [shape: f32[16,32], index: 9, kind: input, shape index: {}]   ;;  %s2477_s10 = inlined_call_operand.hbm [shape: f32[16,32], index: 10, kind: input, shape index: {}]   ;;  %s2478_s11 = inlined_call_operand.hbm [shape: f32[1,32], index: 11, kind: input, shape index: {}]   ;;  %s2479_s12 = inlined_call_operand.vmem [shape: f32[32,2], index: 12, kind: input, shape index: {}]   ;;  %s2480_s13 = inlined_call_operand.hbm [shape: f32[1,2], index: 13, kind: input, shape index: {}]   ;;  %s2481_s14 = inlined_call_operand.hbm [shape: f32[4,64], index: 14, kind: input, shape index: {}]   ;;  %s2482_s15 = inlined_call_operand.hbm [shape: f32[16,64], index: 15, kind: input, shape index: {}]   ;;  %s2483_s16 = inlined_call_operand.hbm [shape: f32[1,64], index: 16, kind: input, shape index: {}]   ;;  %s2484_s17 = inlined_call_operand.vmem [shape: f32[64,72], index: 17, kind: input, shape index: {}]   ;;  %s2485_s18 = inlined_call_operand.hbm [shape: f32[1,72], index: 18, kind: input, shape index: {}]   ;;  %s2486_s19 = inlined_call_operand.vmem [shape: f32[16,64], index: 19, kind: input, shape index: {}]   ;;  %s2487_s20 = inlined_call_operand.hbm [shape: f32[16,64], index: 20, kind: input, shape index: {}]   ;;  %s2488_s21 = inlined_call_operand.vmem [shape: f32[1,64], index: 21, kind: input, shape index: {}]   ;;  %s2489_s22 = inlined_call_operand.vmem [shape: f32[64,40], index: 22, kind: input, shape index: {}]   ;;  %s2490_s23 = inlined_call_operand.vmem [shape: f32[1,40], index: 23, kind: input, shape index: {}]   ;;  %s2491_s24 = inlined_call_operand.vmem [shape: f32[2,256], index: 24, kind: output, shape index: {}]  }
   0x1   :  { %2496 = sst [smem:[#allocation28_spill]] %s2467_s0 }
   0x2   :  { %2497 = sst [smem:[#allocation29_spill]] %s2468_s1 }
   0x3   :  { %2498 = sst [smem:[#allocation30_spill]] %s2469_s2 }
   0x4   :  { %2499 = sst [smem:[#allocation31_spill]] %s2470_s3 }
   0x5   :  { %2500 = sst [smem:[#allocation32_spill]] %s2471_s4 }
   0x6   :  { %2501 = sst [smem:[#allocation33_spill]] %s2472_s5 }
   0x7   :  { %2502 = sst [smem:[#allocation34_spill]] %s2473_s6 }
   0x8   :  { %2503 = sst [smem:[#allocation35_spill]] %s2474_s7 }
   0x9   :  { %2504 = sst [smem:[#allocation36_spill]] %s2475_s8 }
   0xa   :  { %2505 = sst [smem:[#allocation37_spill]] %s2490_s23 }
   0xb   :  { %2506 = sst [smem:[#allocation38_spill]] %s2491_s24 }
   0xc   :  { %29 = vsyncpa [#allocation3], 0 }
   0xd   :  { %30 = vsyncpa [#allocation5], 0 }
   0xe   :  { %31 = vsyncpa [#allocation8], 0 }
   0xf   :  { %32 = vsyncpa [#allocation11], 0 }
  0x10   :  { %33 = vsyncpa [#allocation14], 0 }
  0x11   :  { %34 = vsyncpa [#allocation17], 0 }
  0x12   :  { %35 = vsyncpa [#allocation20], 0  ;;  %s1944_s5 = smov [#allocation4]   ;;  %s2507_s6 = sld [smem:[#allocation33_spill]] }
  0x13   :  { %s59_s26 = sshll.u32 %s1944_s5, 4  ;;  %s60_s26 = int_to_ptr.vmem [resolvable:$true] %s59_s26 }
  0x18   :  { %s1666_s2 = scalar_lea.hbm %s2507_s6, 256 }
  0x19   :  { %p1667_p0 = scmp.ne.s32.totalorder %s2507_s6, %s1666_s2  ;;  %p1670_p1 = scmp.lt.u32.totalorder %s1666_s2, %s2507_s6 }
  0x1b   :  { %p1672_p2 = pnand %p1670_p1, %p1667_p0 }
  0x1d   :  { %1675 = shalt.err (!%p1672_p2)
}
  0x1e   :  { %s1676_s3 = scalar_lea.vmem %s60_s26, 256  ;;  %p1681_p4 = scmp.lt.s32.totalorder %s60_s26, %s60_s26 }
  0x1f   :  { %p1677_p3 = scmp.ne.s32.totalorder %s60_s26, %s1676_s3  ;;  %p1682_p5 = scmp.lt.s32.totalorder %s1676_s3, %s1676_s3 }
  0x21   :  { %p1683_p6 = por %p1682_p5, %p1681_p4 }
  0x23   :  { %p1684_p7 = pnand %p1683_p6, %p1677_p3 }
  0x25   :  { %1687 = shalt.err (!%p1684_p7)
}
  0x26   :  { %s1945_s25 = smov 128   ;;  %s1946_s8 = smov 8  }
  0x27   :  { %65 = dma.hbm_to_vmem [thread:$0]  %s2507_s6, 256, %s60_s26, [#allocation5], %s1945_s25, %s1945_s25, %s1946_s8  }
  0x28   :  { %s1947_s5 = smov [#allocation7]   ;;  %s1948_s28 = smov [#allocation10]  }
  0x29   :  { %s85_s27 = sshll.u32 %s1947_s5, 4  ;;  %s110_s2 = sshll.u32 %s1948_s28, 4  ;;  %s86_s27 = int_to_ptr.vmem [resolvable:$true] %s85_s27  ;;  %s111_s2 = int_to_ptr.vmem [resolvable:$true] %s110_s2 }
  0x2a   :  { %s1688_s7 = scalar_lea.hbm %s2476_s9, 256 }
  0x2b   :  { %p1689_p8 = scmp.ne.s32.totalorder %s2476_s9, %s1688_s7  ;;  %p1692_p9 = scmp.lt.u32.totalorder %s1688_s7, %s2476_s9 }
  0x2d   :  { %p1694_p10 = pnand %p1692_p9, %p1689_p8 }
  0x2f   :  { %1697 = shalt.err (!%p1694_p10)
}
  0x30   :  { %s1698_s26 = scalar_lea.vmem %s86_s27, 256  ;;  %p1703_p12 = scmp.lt.s32.totalorder %s86_s27, %s86_s27 }
  0x31   :  { %p1699_p11 = scmp.ne.s32.totalorder %s86_s27, %s1698_s26  ;;  %p1704_p13 = scmp.lt.s32.totalorder %s1698_s26, %s1698_s26 }
  0x33   :  { %p1705_p0 = por %p1704_p13, %p1703_p12 }
  0x35   :  { %p1706_p1 = pnand %p1705_p0, %p1699_p11 }
  0x37   :  { %1709 = shalt.err (!%p1706_p1)
}
  0x38   :  { %91 = dma.hbm_to_vmem [thread:$0]  %s2476_s9, 256, %s86_s27, [#allocation8], %s1945_s25, %s1945_s25, %s1946_s8  }
  0x39   :  { %s1710_s24 = scalar_lea.hbm %s2478_s11, 16 }
  0x3a   :  { %p1711_p2 = scmp.ne.s32.totalorder %s2478_s11, %s1710_s24  ;;  %p1714_p3 = scmp.lt.u32.totalorder %s1710_s24, %s2478_s11 }
  0x3c   :  { %p1716_p4 = pnand %p1714_p3, %p1711_p2 }
  0x3e   :  { %1719 = shalt.err (!%p1716_p4)
}
  0x3f   :  { %s1720_s7 = scalar_lea.vmem %s111_s2, 16  ;;  %s1724_s30 = scalar_lea.vmem %s111_s2, 32 }
  0x40   :  { %p1721_p5 = scmp.ne.s32.totalorder %s111_s2, %s1720_s7  ;;  %p1725_p6 = scmp.lt.s32.totalorder %s111_s2, %s111_s2 }
  0x41   :  { %p1726_p7 = scmp.lt.s32.totalorder %s1724_s30, %s1720_s7 }
  0x43   :  { %p1727_p8 = por %p1726_p7, %p1725_p6 }
  0x45   :  { %p1728_p9 = pnand %p1727_p8, %p1721_p5 }
  0x47   :  { %1731 = shalt.err (!%p1728_p9)
}
  0x48   :  { %113 = dma.hbm_to_vmem [thread:$0]  %s2478_s11, 16, %s111_s2, [#allocation11]  }
  0x49   :  { %s1949_s3 = smov [#allocation13]   ;;  %s1950_s6 = smov [#allocation16]  }
  0x4a   :  { %s132_s26 = sshll.u32 %s1949_s3, 4  ;;  %s154_s4 = sshll.u32 %s1950_s6, 4  ;;  %s133_s26 = int_to_ptr.vmem [resolvable:$true] %s132_s26  ;;  %s155_s4 = int_to_ptr.vmem [resolvable:$true] %s154_s4 }
  0x4b   :  { %s1732_s24 = scalar_lea.hbm %s2481_s14, 64 }
  0x4c   :  { %p1733_p10 = scmp.ne.s32.totalorder %s2481_s14, %s1732_s24  ;;  %p1736_p11 = scmp.lt.u32.totalorder %s1732_s24, %s2481_s14 }
  0x4e   :  { %p1738_p12 = pnand %p1736_p11, %p1733_p10 }
  0x50   :  { %1741 = shalt.err (!%p1738_p12)
}
  0x51   :  { %s1742_s11 = scalar_lea.vmem %s133_s26, 64  ;;  %p1747_p0 = scmp.lt.s32.totalorder %s133_s26, %s133_s26 }
  0x52   :  { %p1743_p13 = scmp.ne.s32.totalorder %s133_s26, %s1742_s11  ;;  %p1748_p1 = scmp.lt.s32.totalorder %s1742_s11, %s1742_s11 }
  0x54   :  { %p1749_p2 = por %p1748_p1, %p1747_p0 }
  0x56   :  { %p1750_p3 = pnand %p1749_p2, %p1743_p13 }
  0x58   :  { %1753 = shalt.err (!%p1750_p3)
}
  0x59   :  { %135 = dma.hbm_to_vmem [thread:$0]  %s2481_s14, 64, %s133_s26, [#allocation14]  }
  0x5a   :  { %s1754_s27 = scalar_lea.hbm %s2483_s16, 16 }
  0x5b   :  { %p1755_p4 = scmp.ne.s32.totalorder %s2483_s16, %s1754_s27  ;;  %p1758_p5 = scmp.lt.u32.totalorder %s1754_s27, %s2483_s16 }
  0x5d   :  { %p1760_p6 = pnand %p1758_p5, %p1755_p4 }
  0x5f   :  { %1763 = shalt.err (!%p1760_p6)
}
  0x60   :  { %s1764_s24 = scalar_lea.vmem %s155_s4, 16  ;;  %s1768_s5 = scalar_lea.vmem %s155_s4, 32 }
  0x61   :  { %p1765_p7 = scmp.ne.s32.totalorder %s155_s4, %s1764_s24  ;;  %p1769_p8 = scmp.lt.s32.totalorder %s155_s4, %s155_s4 }
  0x62   :  { %p1770_p9 = scmp.lt.s32.totalorder %s1768_s5, %s1764_s24 }
  0x64   :  { %p1771_p10 = por %p1770_p9, %p1769_p8 }
  0x66   :  { %p1772_p11 = pnand %p1771_p10, %p1765_p7 }
  0x68   :  { %1775 = shalt.err (!%p1772_p11)
}
  0x69   :  { %157 = dma.hbm_to_vmem [thread:$0]  %s2483_s16, 16, %s155_s4, [#allocation17]  }
  0x6a   :  { %s1951_s28 = smov [#allocation2]   ;;  %s1952_s0 = smov [#allocation6]  }
  0x6b   :  { %s50_s29 = sshll.u32 %s1951_s28, 4  ;;  %s76_s11 = sshll.u32 %s1952_s0, 4  ;;  %s51_s29 = int_to_ptr.vmem [resolvable:$true] %s50_s29  ;;  %s77_s11 = int_to_ptr.vmem [resolvable:$true] %s76_s11 }
  0x6c   :  { %s2508_s30 = sld [smem:[#allocation32_spill]] }
  0x72   :  { %s1776_s9 = scalar_lea.hbm %s2508_s30, 64 }
  0x73   :  { %p1777_p12 = scmp.ne.s32.totalorder %s2508_s30, %s1776_s9  ;;  %p1780_p13 = scmp.lt.u32.totalorder %s1776_s9, %s2508_s30 }
  0x75   :  { %p1782_p0 = pnand %p1780_p13, %p1777_p12 }
  0x77   :  { %1785 = shalt.err (!%p1782_p0)
}
  0x78   :  { %s1786_s16 = scalar_lea.vmem %s51_s29, 64  ;;  %p1791_p2 = scmp.lt.s32.totalorder %s51_s29, %s51_s29 }
  0x79   :  { %p1787_p1 = scmp.ne.s32.totalorder %s51_s29, %s1786_s16  ;;  %p1792_p3 = scmp.lt.s32.totalorder %s1786_s16, %s1786_s16 }
  0x7b   :  { %p1793_p4 = por %p1792_p3, %p1791_p2 }
  0x7d   :  { %p1794_p5 = pnand %p1793_p4, %p1787_p1 }
  0x7f   :  { %1797 = shalt.err (!%p1794_p5)
}
  0x80   :  { %53 = dma.hbm_to_vmem [thread:$0]  %s2508_s30, 64, %s51_s29, [#allocation3]  }
  0x81   :  { %s2509_s14 = sld [smem:[#allocation36_spill]] }
  0x87   :  { %s1798_s26 = scalar_lea.hbm %s2509_s14, 16 }
  0x88   :  { %p1799_p6 = scmp.ne.s32.totalorder %s2509_s14, %s1798_s26  ;;  %p1802_p7 = scmp.lt.u32.totalorder %s1798_s26, %s2509_s14 }
  0x8a   :  { %p1804_p8 = pnand %p1802_p7, %p1799_p6 }
  0x8c   :  { %1807 = shalt.err (!%p1804_p8)
}
  0x8d   :  { %s1808_s9 = scalar_lea.vmem %s77_s11, 16  ;;  %s1812_s27 = scalar_lea.vmem %s77_s11, 32 }
  0x8e   :  { %p1809_p9 = scmp.ne.s32.totalorder %s77_s11, %s1808_s9  ;;  %p1813_p10 = scmp.lt.s32.totalorder %s77_s11, %s77_s11 }
  0x8f   :  { %p1814_p11 = scmp.lt.s32.totalorder %s1812_s27, %s1808_s9 }
  0x91   :  { %p1815_p12 = por %p1814_p11, %p1813_p10 }
  0x93   :  { %p1816_p13 = pnand %p1815_p12, %p1809_p9 }
  0x95   :  { %1819 = shalt.err (!%p1816_p13)
}
  0x96   :  { %79 = dma.hbm_to_vmem [thread:$0]  %s2509_s14, 16, %s77_s11, [#allocation5]  }
  0x97   :  { %s1953_s3 = smov [#allocation9]   ;;  %s1954_s1 = smov [#allocation12]  }
  0x98   :  { %s97_s6 = sshll.u32 %s1953_s3, 4  ;;  %s122_s16 = sshll.u32 %s1954_s1, 4  ;;  %s98_s6 = int_to_ptr.vmem [resolvable:$true] %s97_s6  ;;  %s123_s16 = int_to_ptr.vmem [resolvable:$true] %s122_s16 }
  0x99   :  { %s1820_s24 = scalar_lea.hbm %s2477_s10, 256 }
  0x9a   :  { %p1821_p0 = scmp.ne.s32.totalorder %s2477_s10, %s1820_s24  ;;  %p1824_p1 = scmp.lt.u32.totalorder %s1820_s24, %s2477_s10 }
  0x9c   :  { %p1826_p2 = pnand %p1824_p1, %p1821_p0 }
  0x9e   :  { %1829 = shalt.err (!%p1826_p2)
}
  0x9f   :  { %s1830_s11 = scalar_lea.vmem %s98_s6, 256  ;;  %p1835_p4 = scmp.lt.s32.totalorder %s98_s6, %s98_s6 }
  0xa0   :  { %p1831_p3 = scmp.ne.s32.totalorder %s98_s6, %s1830_s11  ;;  %p1836_p5 = scmp.lt.s32.totalorder %s1830_s11, %s1830_s11 }
  0xa2   :  { %p1837_p6 = por %p1836_p5, %p1835_p4 }
  0xa4   :  { %p1838_p7 = pnand %p1837_p6, %p1831_p3 }
  0xa6   :  { %1841 = shalt.err (!%p1838_p7)
}
  0xa7   :  { %103 = dma.hbm_to_vmem [thread:$0]  %s2477_s10, 256, %s98_s6, [#allocation8], %s1945_s25, %s1945_s25, %s1946_s8  }
  0xa8   :  { %s1842_s27 = scalar_lea.hbm %s2480_s13, 16 }
  0xa9   :  { %p1843_p8 = scmp.ne.s32.totalorder %s2480_s13, %s1842_s27  ;;  %p1846_p9 = scmp.lt.u32.totalorder %s1842_s27, %s2480_s13 }
  0xab   :  { %p1848_p10 = pnand %p1846_p9, %p1843_p8 }
  0xad   :  { %1851 = shalt.err (!%p1848_p10)
}
  0xae   :  { %s1852_s4 = scalar_lea.vmem %s123_s16, 16  ;;  %s1856_s23 = scalar_lea.vmem %s123_s16, 32 }
  0xaf   :  { %p1853_p11 = scmp.ne.s32.totalorder %s123_s16, %s1852_s4  ;;  %p1857_p12 = scmp.lt.s32.totalorder %s123_s16, %s123_s16 }
  0xb0   :  { %p1858_p13 = scmp.lt.s32.totalorder %s1856_s23, %s1852_s4 }
  0xb2   :  { %p1859_p0 = por %p1858_p13, %p1857_p12 }
  0xb4   :  { %p1860_p1 = pnand %p1859_p0, %p1853_p11 }
  0xb6   :  { %1863 = shalt.err (!%p1860_p1)
}
  0xb7   :  { %125 = dma.hbm_to_vmem [thread:$0]  %s2480_s13, 16, %s123_s16, [#allocation11]  }
  0xb8   :  { %s1955_s24 = smov [#allocation15]   ;;  %s1956_s26 = smov [#allocation18]  }
  0xb9   :  { %s141_s5 = sshll.u32 %s1955_s24, 4  ;;  %s166_s28 = sshll.u32 %s1956_s26, 4  ;;  %s142_s5 = int_to_ptr.vmem [resolvable:$true] %s141_s5  ;;  %s167_s28 = int_to_ptr.vmem [resolvable:$true] %s166_s28 }
  0xba   :  { %s1864_s14 = scalar_lea.hbm %s2482_s15, 256 }
  0xbb   :  { %p1865_p2 = scmp.ne.s32.totalorder %s2482_s15, %s1864_s14  ;;  %p1868_p3 = scmp.lt.u32.totalorder %s1864_s14, %s2482_s15 }
  0xbd   :  { %p1870_p4 = pnand %p1868_p3, %p1865_p2 }
  0xbf   :  { %1873 = shalt.err (!%p1870_p4)
}
  0xc0   :  { %s1874_s13 = scalar_lea.vmem %s142_s5, 256  ;;  %p1879_p6 = scmp.lt.s32.totalorder %s142_s5, %s142_s5 }
  0xc1   :  { %p1875_p5 = scmp.ne.s32.totalorder %s142_s5, %s1874_s13  ;;  %p1880_p7 = scmp.lt.s32.totalorder %s1874_s13, %s1874_s13 }
  0xc3   :  { %p1881_p8 = por %p1880_p7, %p1879_p6 }
  0xc5   :  { %p1882_p9 = pnand %p1881_p8, %p1875_p5 }
  0xc7   :  { %1885 = shalt.err (!%p1882_p9)
}
  0xc8   :  { %147 = dma.hbm_to_vmem [thread:$0]  %s2482_s15, 256, %s142_s5, [#allocation14], %s1945_s25, %s1945_s25, %s1946_s8  }
  0xc9   :  { %s1886_s1 = scalar_lea.hbm %s2485_s18, 16 }
  0xca   :  { %p1887_p10 = scmp.ne.s32.totalorder %s2485_s18, %s1886_s1  ;;  %p1890_p11 = scmp.lt.u32.totalorder %s1886_s1, %s2485_s18 }
  0xcc   :  { %p1892_p12 = pnand %p1890_p11, %p1887_p10 }
  0xce   :  { %1895 = shalt.err (!%p1892_p12)
}
  0xcf   :  { %s1896_s24 = scalar_lea.vmem %s167_s28, 16  ;;  %s1900_s26 = scalar_lea.vmem %s167_s28, 32 }
  0xd0   :  { %p1897_p13 = scmp.ne.s32.totalorder %s167_s28, %s1896_s24  ;;  %p1901_p0 = scmp.lt.s32.totalorder %s167_s28, %s167_s28 }
  0xd1   :  { %p1902_p1 = scmp.lt.s32.totalorder %s1900_s26, %s1896_s24 }
  0xd3   :  { %p1903_p2 = por %p1902_p1, %p1901_p0 }
  0xd5   :  { %p1904_p3 = pnand %p1903_p2, %p1897_p13 }
  0xd7   :  { %1907 = shalt.err (!%p1904_p3)
}
  0xd8   :  { %169 = dma.hbm_to_vmem [thread:$0]  %s2485_s18, 16, %s167_s28, [#allocation17]  }
  0xd9   :  { %s1957_s0 = smov [#allocation19]   ;;  %s1908_s7 = scalar_lea.hbm %s2487_s20, 256 }
  0xda   :  { %s177_s11 = sshll.u32 %s1957_s0, 4  ;;  %p1909_p4 = scmp.ne.s32.totalorder %s2487_s20, %s1908_s7  ;;  %s178_s11 = int_to_ptr.vmem [resolvable:$true] %s177_s11 }
  0xdb   :  { %p1912_p5 = scmp.lt.u32.totalorder %s1908_s7, %s2487_s20 }
  0xdd   :  { %p1914_p6 = pnand %p1912_p5, %p1909_p4 }
  0xdf   :  { %1917 = shalt.err (!%p1914_p6)
}
  0xe0   :  { %s1918_s29 = scalar_lea.vmem %s178_s11, 256  ;;  %p1923_p8 = scmp.lt.s32.totalorder %s178_s11, %s178_s11 }
  0xe1   :  { %p1919_p7 = scmp.ne.s32.totalorder %s178_s11, %s1918_s29  ;;  %p1924_p9 = scmp.lt.s32.totalorder %s1918_s29, %s1918_s29 }
  0xe3   :  { %p1925_p10 = por %p1924_p9, %p1923_p8 }
  0xe5   :  { %p1926_p11 = pnand %p1925_p10, %p1919_p7 }
  0xe7   :  { %1929 = shalt.err (!%p1926_p11)
}
  0xe8   :  { %183 = dma.hbm_to_vmem [thread:$0]  %s2487_s20, 256, %s178_s11, [#allocation20], %s1945_s25, %s1945_s25, %s1946_s8  }
  0xe9   :  { %1930 = dma.done.wait [#allocation3], 64  }
  0xea   :  { %1931 = vsyncadd [#allocation3], 4294967232 }
  0xeb   :  { %1932 = dma.done.wait [#allocation5], 272  }
  0xec   :  { %1933 = vsyncadd [#allocation5], 4294967024 }
  0xed   :  { %1934 = dma.done.wait [#allocation8], 512  }
  0xee   :  { %1935 = vsyncadd [#allocation8], 4294966784 }
  0xef   :  { %1936 = dma.done.wait [#allocation11], 32  }
  0xf0   :  { %1937 = vsyncadd [#allocation11], 4294967264 }
  0xf1   :  { %1938 = dma.done.wait [#allocation14], 320  }
  0xf2   :  { %1939 = vsyncadd [#allocation14], 4294966976 }
  0xf3   :  { %1940 = dma.done.wait [#allocation17], 32  }
  0xf4   :  { %1941 = vsyncadd [#allocation17], 4294967264 }
  0xf5   :  { %1942 = dma.done.wait [#allocation20], 256  }
  0xf6   :  { %1943 = vsyncadd [#allocation20], 4294967040  ;;  %v1958_v0 = vmov 0.0|0.0   ;;  %vm1959_vm0 = vmmov 0   ;;  %v1960_v1 = vmov 0.0   ;;  %v231_v2 = vld [vmem:[#allocation4] sm:$0xff] }
  0xf7   :  { %1560 = vmatprep.subr.bf16.mxu1 %v1958_v0  ;;  %1444 = vmatprep.mubr.msk.f32.mxu1 %vm1959_vm0, %v1960_v1  ;;  %v232_v3 = vld [vmem:[#allocation4 + $0x8] sm:$0xff]  ;;  %s2510_s30 = sld [smem:[#allocation29_spill]]  ;;  %vm243_vm1 = vcmask 130048   ;;  %v230_v6 = vld [vmem:[#allocation2] sm:$0xf]  ;;  %vm321_vm2 = vcmask 1043456  }
  0xf8   :  { %1575 = vmatprep.subr.bf16.mxu0 %v1958_v0  ;;  %1475 = vmatprep.mubr.msk.f32.mxu0 %vm1959_vm0, %v1960_v1  ;;  %v1561_v4 = vpack.c.bf16 %v232_v3, %v231_v2  ;;  %s2511_s4 = sld [smem:[#allocation35_spill]]  ;;  %s2512_s26 = sld [smem:[#allocation28_spill]]  ;;  %vm317_vm3 = vcmask 31744   ;;  %vm498_vm4 = vcmask 261120   ;;  %vm500_vm5 = vcmask 392192   ;;  %v509_v34 = vld [vmem:[#allocation9] sm:$0xff] }
  0xf9   :  { %s1961_s18 = smov 16   ;;  %s1962_s28 = smov 48   ;;  %vm409_vm6 = vcmask 523264   ;;  %v510_v35 = vld [vmem:[#allocation9 + $0x8] sm:$0xff]  ;;  %v507_v48 = vld [vmem:[#allocation7] sm:$0xff]  ;;  %v508_v49 = vld [vmem:[#allocation7 + $0x8] sm:$0xff] }
  0xfa   :  { %1562 = vmatpush3.bf16.msra.mxu1 %v1561_v4  ;;  %s1963_s20 = smov 32   ;;  %s2513_s3 = sld [smem:[#allocation34_spill]]  ;;  %v1576_v36 = vpack.c.bf16 %v510_v35, %v509_v34  ;;  %v1367_v37 = vld [vmem:[#allocation6] ss:$0 sm:$0xff]  ;;  %v1579_v50 = vpack.c.bf16 %v508_v49, %v507_v48  ;;  %v668_v53 = vld [vmem:[%s2479_s12] sm:$0xff]  ;;  %v669_v54 = vld [vmem:[%s2479_s12 + $0x8] sm:$0xff] }
  0xfb   :  { %1447 = vmatprep.subr.mxu1 %v1960_v1  ;;  %s1964_s1 = smov 88   ;;  %s2514_s10 = sld [smem:[#allocation30_spill]]  ;;  %v1582_v55 = vpack.c.bf16 %v669_v54, %v668_v53  ;;  %v670_v56 = vld [vmem:[%s2479_s12 + $0x10] sm:$0xff]  ;;  %v671_v57 = vld [vmem:[%s2479_s12 + $0x18] sm:$0xff]  ;;  %vm1329_vm7 = vcmask 64512   ;;  %vm1331_vm8 = vcmask 588800  }
  0xfc   :  { %1577 = vmatpush3.bf16.msra.mxu0 %v1576_v36  ;;  %v1585_v58 = vpack.c.bf16 %v671_v57, %v670_v56  ;;  %v1371_v62 = vld [vmem:[#allocation10] ss:$0 sm:$0xff]  ;;  %s1967_s12 = smov 40   ;;  %s2515_s9 = sld [smem:[#allocation31_spill]]  ;;  %v784_v48 = vld [vmem:[%s2484_s17 + $0x38] sm:$0xff]  ;;  %vm1336_vm9 = vcmask 195584  }
  0xfd   :  { %v227_v5 = vld [vmem:[%s2510_s30] sm:$0x3]  ;;  %1578 = vmatprep.subr.bf16.mxu0 %v1958_v0  ;;  %s1968_s27 = smov 104   ;;  %s1969_s13 = smov 120   ;;  %v1049_v56 = vld [vmem:[#allocation19] sm:$0xff]  ;;  %vm1333_vm10 = vcmask 654336  }
  0xfe   :  { %v234_v7 = vld [vmem:[%s2511_s4] sm:$0xff]  ;;  %v235_v8 = vld [vmem:[%s2511_s4 + $0x8] sm:$0xff]  ;;  %1445 = vmatmul.mubr.msk.f32.vlgmr.msra.gmra.mrb[0].mxu1 %vm243_vm1, %v227_v5  ;;  %v236_v11 = vld [vmem:[%s2511_s4 + $0x10] sm:$0xff]  ;;  %488 = vrot.lane.b32.xlu0 %v227_v5, %s1961_s18  ;;  %s1970_s23 = smov 72   ;;  %s2516_s15 = sld [smem:[#allocation37_spill]]  ;;  %vm1338_vm11 = vcmask 457728  }
  0xff   :  { %1448 = vmatpush3.msk.msra.mxu1 %vm321_vm2, %v230_v6  ;;  %1449 = vmatprep.mubr.msk.f32.mxu1 %vm1959_vm0, %v1960_v1  ;;  %v226_v9 = vld [vmem:[%s2512_s26] sm:$0x3]  ;;  %v1564_v10 = vpack.c.bf16 %v235_v8, %v234_v7  ;;  %v237_v12 = vld [vmem:[%s2511_s4 + $0x18] sm:$0xff]  ;;  %v239_v15 = vld [vmem:[%s2511_s4 + $0x28] sm:$0xff]  ;;  %v1966_v6 = vmov 0  }
 0x100   :  { %1563 = vmatprep.subr.bf16.mxu1 %v1958_v0  ;;  %v1567_v13 = vpack.c.bf16 %v237_v12, %v236_v11  ;;  %v238_v14 = vld [vmem:[%s2511_s4 + $0x20] sm:$0xff]  ;;  %v240_v17 = vld [vmem:[%s2511_s4 + $0x30] sm:$0xff]  ;;  %v241_v18 = vld [vmem:[%s2511_s4 + $0x38] sm:$0xff]  ;;  %494 = vrot.lane.b32.xlu1 %v227_v5, %s1962_s28 }
 0x101   :  { %v1570_v16 = vpack.c.bf16 %v239_v15, %v238_v14  ;;  %v1573_v19 = vpack.c.bf16 %v241_v18, %v240_v17  ;;  %v1366_v27 = vld [vmem:[%s2513_s3] ss:$0 sm:$0xff]  ;;  %1648 = vset.pattern.permute.xlu0 %v1966_v6  ;;  %v1372_v7 = vld [vmem:[#allocation12] ss:$0 sm:$0xff]  ;;  %v775_v17 = vld [vmem:[#allocation15 + $0x8] sm:$0xff] }
 0x102   :  { %1450 = vmatmul.mubr.msk.f32.vlgmr.msra.gmra.mrb[2].mxu1 %vm317_vm3, %v226_v9  ;;  %491 = vrot.lane.b32.xlu0 %v227_v5, %s1963_s20  ;;  %v228_v52 = vld [vmem:[%s2514_s10] sm:$0x3]  ;;  %v773_v18 = vld [vmem:[#allocation13] sm:$0xf] }
 0x103   :  { %1565 = vmatpush3.bf16.msra.mxu1 %v1564_v10  ;;  %1468 = vmatprep.mubr.msk.f32.mxu1 %vm1959_vm0, %v1960_v1  ;;  %v1050_v57 = vld [vmem:[#allocation19 + $0x8] sm:$0xff] }
 0x104   :  { %1566 = vmatprep.subr.bf16.mxu1 %v1958_v0 }
 0x107   :  { %1568 = vmatpush3.bf16.msra.mxu1 %v1567_v13 }
 0x108   :  { %1569 = vmatprep.subr.bf16.mxu1 %v1958_v0 }
 0x10b   :  { %1571 = vmatpush3.bf16.msra.mxu1 %v1570_v16  ;;  %v774_v16 = vld [vmem:[#allocation15] sm:$0xff] }
 0x10c   :  { %1572 = vmatprep.subr.bf16.mxu1 %v1958_v0 }
 0x10f   :  { %1574 = vmatpush3.bf16.msra.mxu1 %v1573_v19  ;;  %v1588_v19 = vpack.c.bf16 %v775_v17, %v774_v16 }
 0x110   :  { %1587 = vmatprep.subr.bf16.mxu1 %v1958_v0 }
 0x170   :  { %v489_v20 = vpop.permute.xlu0 %488 }
 0x171   :  { %v497_v22 = vsel %vm243_vm1, %v227_v5, %v489_v20  ;;  %v1965_v5 = vmov 1  }
 0x172   :  { %v495_v24 = vpop.permute.xlu1 %494  ;;  %1647 = vset.pattern.permute.xlu1 %v1965_v5 }
 0x174   :  { %v492_v25 = vpop.permute.xlu0 %491 }
 0x175   :  { %v499_v26 = vsel %vm498_vm4, %v497_v22, %v492_v25  ;;  %v229_v22 = vld [vmem:[%s2515_s9] sm:$0x3] }
 0x176   :  { %v501_v29 = vsel %vm500_vm5, %v499_v26, %v495_v24 }
 0x177   :  { %503 = vrot.lane.b32.xlu1 %v501_v29, %s1946_s8 }
 0x1d1   :  { %v313_v21 = vpop.f32.mrb[0].mxu1 }
 0x1d2   :  { %v1446_v23 = vpop.f32.mrb[1].mxu1 }
 0x1d5   :  { %v391_v28 = vpop.f32.mrb[2].mxu1 }
 0x1d6   :  { %v392_v30 = vadd.f32 %v391_v28, %v313_v21  ;;  %v1451_v31 = vpop.f32.mrb[3].mxu1  ;;  %v778_v28 = vld [vmem:[%s2484_s17 + $0x8] sm:$0xff] }
 0x1d7   :  { %v780_v31 = vld [vmem:[%s2484_s17 + $0x18] sm:$0xff] }
 0x1d8   :  { %v401_v32 = vadd.f32 %v1366_v27, %v392_v30  ;;  %v777_v27 = vld [vmem:[%s2484_s17] sm:$0xff]  ;;  %v779_v30 = vld [vmem:[%s2484_s17 + $0x10] sm:$0xff] }
 0x1d9   :  { %v1591_v29 = vpack.c.bf16 %v778_v28, %v777_v27  ;;  %v1594_v34 = vpack.c.bf16 %v780_v31, %v779_v30  ;;  %v1382_v30 = vld [vmem:[%s2488_s21] ss:$0 sm:$0xff] }
 0x1da   :  { %v402_v33 = vmax.f32 %v401_v32, 0.0 }
 0x1dc   :  { %1469 = vmatmul.mubr.msk.f32.vlgmr.msra.gmra.mrb[4].mxu1 %vm409_vm6, %v402_v33 }
 0x1dd   :  { %1500 = vmatprep.mubr.msk.f32.mxu1 %vm1959_vm0, %v1960_v1  ;;  %1589 = vmatpush3.bf16.msra.mxu1 %v1588_v19 }
 0x1de   :  { %1590 = vmatprep.subr.bf16.mxu1 %v1958_v0 }
 0x1e9   :  { %v504_v46 = vpop.permute.xlu1 %503 }
 0x2af   :  { %v479_v38 = vpop.f32.mrb[4].mxu1 }
 0x2b0   :  { %v2316_v39 = vadd.f32 %v1367_v37, %v479_v38  ;;  %v1470_v40 = vpop.f32.mrb[5].mxu1 }
 0x2b2   :  { %v483_v41 = vsub.f32 0.0, %v2316_v39 }
 0x2b4   :  { %v484_v42 = vmul.f32 1.442695, %v483_v41  ;;  %v781_v41 = vld [vmem:[%s2484_s17 + $0x20] sm:$0xff] }
 0x2b6   :  { %1650 = vpow2.f32 %v484_v42  ;;  %v782_v42 = vld [vmem:[%s2484_s17 + $0x28] sm:$0xff] }
 0x2c0   :  { %v1651_v43 = vpop.eup %1650 }
 0x2c1   :  { %v486_v44 = vadd.f32 1.0, %v1651_v43  ;;  %v1597_v43 = vpack.c.bf16 %v782_v42, %v781_v41 }
 0x2c3   :  { %1652 = vrcp.f32 %v486_v44 }
 0x2cd   :  { %v1653_v45 = vpop.eup %1652 }
 0x2ce   :  { %v2319_v47 = vmul.f32 %v1653_v45, %v504_v46  ;;  %v783_v46 = vld [vmem:[%s2484_s17 + $0x30] sm:$0xff] }
 0x2cf   :  { %v1600_v49 = vpack.c.bf16 %v784_v48, %v783_v46 }
 0x2d0   :  { %512 = vrot.lane.b32.xlu0 %v2319_v47, %s1964_s1 }
 0x342   :  { %v513_v51 = vpop.permute.xlu0 %512 }
 0x343   :  { %1476 = vmatmul.mubr.msk.f32.vlgmr.msra.gmra.mrb[0].mxu0 %vm243_vm1, %v513_v51  ;;  %v1377_v51 = vld [vmem:[#allocation16] ss:$0 sm:$0xff] }
 0x344   :  { %1580 = vmatpush3.bf16.msra.mxu0 %v1579_v50  ;;  %1482 = vmatprep.mubr.msk.f32.mxu0 %vm1959_vm0, %v1960_v1 }
 0x345   :  { %1581 = vmatprep.subr.bf16.mxu0 %v1958_v0 }
 0x347   :  { %1483 = vmatmul.mubr.msk.f32.vlgmr.msra.gmra.mrb[2].mxu0 %vm243_vm1, %v228_v52 }
 0x348   :  { %1493 = vmatprep.mubr.msk.f32.mxu0 %vm1959_vm0, %v1960_v1  ;;  %1583 = vmatpush3.bf16.msra.mxu0 %v1582_v55 }
 0x349   :  { %1584 = vmatprep.subr.bf16.mxu0 %v1958_v0 }
 0x34c   :  { %1586 = vmatpush3.bf16.msra.mxu0 %v1585_v58  ;;  %v1603_v58 = vpack.c.bf16 %v1050_v57, %v1049_v56 }
 0x34d   :  { %1503 = vmatprep.subr.mxu0 %v1960_v1 }
 0x416   :  { %v582_v59 = vpop.f32.mrb[0].mxu0 }
 0x417   :  { %v1477_v60 = vpop.f32.mrb[1].mxu0 }
 0x41a   :  { %v655_v61 = vpop.f32.mrb[2].mxu0 }
 0x41b   :  { %v656_v63 = vadd.f32 %v655_v61, %v582_v59  ;;  %v1484_v2 = vpop.f32.mrb[3].mxu0  ;;  %v1378_v59 = vld [vmem:[#allocation18] ss:$0 sm:$0xff] }
 0x41d   :  { %v666_v3 = vadd.f32 %v1371_v62, %v656_v63 }
 0x41f   :  { %v667_v4 = vmax.f32 %v666_v3, 0.0 }
 0x421   :  { %1494 = vmatmul.mubr.msk.f32.vlgmr.msra.gmra.mrb[4].mxu0 %vm498_vm4, %v667_v4 }
 0x422   :  { %1505 = vmatprep.mubr.msk.f32.mxu0 %vm1959_vm0, %v1960_v1  ;;  %1504 = vmatpush3.msk.msra.mxu0 %vm321_vm2, %v773_v18 }
 0x423   :  { %1602 = vmatprep.subr.bf16.mxu0 %v1958_v0 }
 0x425   :  { %1506 = vmatmul.mubr.msk.f32.vlgmr.msra.gmra.mrb[6].mxu0 %vm317_vm3, %v229_v22 }
 0x426   :  { %1531 = vmatprep.mubr.msk.f32.mxu0 %vm1959_vm0, %v1960_v1  ;;  %1604 = vmatpush3.bf16.msra.mxu0 %v1603_v58 }
 0x427   :  { %1605 = vmatprep.subr.bf16.mxu0 %v1958_v0 }
 0x4f4   :  { %v748_v8 = vpop.f32.mrb[4].mxu0 }
 0x4f5   :  { %v749_v9 = vadd.f32 %v1372_v7, %v748_v8  ;;  %v1495_v10 = vpop.f32.mrb[5].mxu0 }
 0x4f6   :  { %v1048_v10 = vld [vmem:[%s2486_s19 + $0x8] sm:$0xff] }
 0x4f7   :  { %v752_v11 = vsub.f32 0.0, %v749_v9  ;;  %v1047_v9 = vld [vmem:[%s2486_s19] sm:$0xff] }
 0x4f8   :  { %v933_v44 = vpop.f32.mrb[6].mxu0 }
 0x4f9   :  { %v753_v12 = vmul.f32 1.442695, %v752_v11  ;;  %v1507_v45 = vpop.f32.mrb[7].mxu0  ;;  %v1606_v11 = vpack.c.bf16 %v1048_v10, %v1047_v9 }
 0x4fb   :  { %1654 = vpow2.f32 %v753_v12  ;;  %v1052_v12 = vld [vmem:[%s2489_s22] sm:$0xff] }
 0x505   :  { %v1655_v13 = vpop.eup %1654 }
 0x506   :  { %v755_v14 = vadd.f32 1.0, %v1655_v13  ;;  %v1053_v13 = vld [vmem:[%s2489_s22 + $0x8] sm:$0xff] }
 0x507   :  { %v1609_v16 = vpack.c.bf16 %v1053_v13, %v1052_v12 }
 0x508   :  { %1656 = vrcp.f32 %v755_v14 }
 0x512   :  { %v1657_v15 = vpop.eup %1656 }
 0x513   :  { %759 = vperm.xlu0 %1648, %v1657_v15   ;;  %764 = vperm.xlu1 %1647, %v1657_v15  }
 0x517   :  { %1649 = vset.pattern.permute.xlu0 %v1965_v5 }
 0x592   :  { %v765_v20 = vpop.permute.xlu1 %764  ;;  %v760_v23 = vpop.permute.xlu0 %759 }
 0x593   :  { %v767_v21 = vmul.f32 %v765_v20, %v228_v52  ;;  %v762_v24 = vmul.f32 %v760_v23, %v2319_v47  ;;  %v1054_v20 = vld [vmem:[%s2489_s22 + $0x10] sm:$0xff]  ;;  %v1056_v23 = vld [vmem:[%s2489_s22 + $0x20] sm:$0xff] }
 0x595   :  { %769 = vrot.lane.b32.xlu1 %v767_v21, %s1967_s12  ;;  %v1055_v21 = vld [vmem:[%s2489_s22 + $0x18] sm:$0xff] }
 0x596   :  { %v1612_v22 = vpack.c.bf16 %v1055_v21, %v1054_v20 }
 0x607   :  { %v770_v25 = vpop.permute.xlu1 %769 }
 0x608   :  { %v772_v26 = vadd.f32 %v770_v25, %v762_v24  ;;  %v1058_v25 = vld [vmem:[%s2489_s22 + $0x30] sm:$0xff] }
 0x60a   :  { %1030 = vrot.lane.b32.xlu0 %v772_v26, %s1968_s27  ;;  %787 = vrot.lane.b32.xlu1 %v772_v26, %s1964_s1 }
 0x60e   :  { %1036 = vrot.lane.b32.xlu0 %v772_v26, %s1946_s8  ;;  %1033 = vrot.lane.b32.xlu1 %v772_v26, %s1969_s13  ;;  %v1059_v26 = vld [vmem:[%s2489_s22 + $0x38] sm:$0xff] }
 0x60f   :  { %v1618_v27 = vpack.c.bf16 %v1059_v26, %v1058_v25 }
 0x67c   :  { %v1031_v32 = vpop.permute.xlu0 %1030  ;;  %v788_v33 = vpop.permute.xlu1 %787 }
 0x67d   :  { %1501 = vmatmul.mubr.msk.f32.vlgmr.msra.gmra.mrb[6].mxu1 %vm243_vm1, %v788_v33  ;;  %v1039_v35 = vsel %vm243_vm1, %v788_v33, %v1031_v32 }
 0x67e   :  { %1592 = vmatpush3.bf16.msra.mxu1 %v1591_v29  ;;  %1524 = vmatprep.mubr.msk.f32.mxu1 %vm1959_vm0, %v1960_v1 }
 0x67f   :  { %1593 = vmatprep.subr.bf16.mxu1 %v1958_v0 }
 0x680   :  { %v1037_v36 = vpop.permute.xlu0 %1036  ;;  %v1034_v37 = vpop.permute.xlu1 %1033 }
 0x681   :  { %v1040_v38 = vsel %vm498_vm4, %v1039_v35, %v1034_v37  ;;  %v1383_v35 = vld [vmem:[%s2516_s15] ss:$0 sm:$0xff] }
 0x682   :  { %v1041_v40 = vsel %vm500_vm5, %v1040_v38, %v1037_v36  ;;  %1595 = vmatpush3.bf16.msra.mxu1 %v1594_v34 }
 0x683   :  { %1043 = vrot.lane.b32.xlu1 %v1041_v40, %s1946_s8  ;;  %1596 = vmatprep.subr.bf16.mxu1 %v1958_v0 }
 0x686   :  { %1598 = vmatpush3.bf16.msra.mxu1 %v1597_v43 }
 0x687   :  { %1136 = vrot.lane.b32.xlu1 %v2319_v47, %s1970_s23  ;;  %1599 = vmatprep.subr.bf16.mxu1 %v1958_v0 }
 0x68a   :  { %1601 = vmatpush3.bf16.msra.mxu1 %v1600_v49 }
 0x6f5   :  { %v1044_v6 = vpop.permute.xlu1 %1043 }
 0x6f9   :  { %v1137_v14 = vpop.permute.xlu1 %1136 }
 0x750   :  { %v857_v50 = vpop.f32.mrb[6].mxu1 }
 0x751   :  { %v934_v52 = vadd.f32 %v933_v44, %v857_v50  ;;  %v1502_v53 = vpop.f32.mrb[7].mxu1  ;;  %v1330_v50 = vsel %vm1329_vm7, %v2316_v39, %v2319_v47 }
 0x753   :  { %v943_v54 = vadd.f32 %v1377_v51, %v934_v52 }
 0x755   :  { %v944_v55 = vmax.f32 %v943_v54, 0.0 }
 0x757   :  { %1525 = vmatmul.mubr.msk.f32.vlgmr.msra.gmra.mrb[8].mxu1 %vm409_vm6, %v944_v55 }
 0x82a   :  { %v1020_v60 = vpop.f32.mrb[8].mxu1 }
 0x82b   :  { %v1021_v61 = vadd.f32 %v1378_v59, %v1020_v60  ;;  %v1526_v62 = vpop.f32.mrb[9].mxu1 }
 0x82d   :  { %v1024_v63 = vsub.f32 0.0, %v1021_v61 }
 0x82f   :  { %v1025_v2 = vmul.f32 1.442695, %v1024_v63 }
 0x831   :  { %1658 = vpow2.f32 %v1025_v2 }
 0x83b   :  { %v1659_v3 = vpop.eup %1658 }
 0x83c   :  { %v1027_v4 = vadd.f32 1.0, %v1659_v3 }
 0x83e   :  { %1660 = vrcp.f32 %v1027_v4 }
 0x848   :  { %v1661_v5 = vpop.eup %1660 }
 0x849   :  { %v1046_v7 = vmul.f32 %v1661_v5, %v1044_v6 }
 0x84b   :  { %1062 = vrot.lane.b32.xlu0 %v1046_v7, %s1970_s23  ;;  %v1302_v8 = vadd.f32 %v1046_v7, %v2319_v47 }
 0x84d   :  { %1307 = vrot.lane.b32.xlu1 %v1302_v8, %s1964_s1 }
 0x84f   :  { %1304 = vrot.lane.b32.xlu0 %v1302_v8, %s1970_s23 }
 0x8bd   :  { %v2416_v15 = vpop.permute.xlu0 %1062 }
 0x8be   :  { %1532 = vmatmul.mubr.msk.f32.vlgmr.msra.gmra.mrb[8].mxu0 %vm243_vm1, %v2416_v15 }
 0x8bf   :  { %1607 = vmatpush3.bf16.msra.mxu0 %v1606_v11  ;;  %1538 = vmatprep.mubr.msk.f32.mxu0 %vm1959_vm0, %v1960_v1  ;;  %v1308_v17 = vpop.permute.xlu1 %1307 }
 0x8c0   :  { %1608 = vmatprep.subr.bf16.mxu0 %v1958_v0 }
 0x8c1   :  { %v1305_v18 = vpop.permute.xlu0 %1304 }
 0x8c2   :  { %1539 = vmatmul.mubr.msk.f32.vlgmr.msra.gmra.mrb[10].mxu0 %vm243_vm1, %v1137_v14  ;;  %v1310_v19 = vsel %vm243_vm1, %v1305_v18, %v1308_v17 }
 0x8c3   :  { %1312 = vrot.lane.b32.xlu0 %v1310_v19, %s1946_s8  ;;  %1610 = vmatpush3.bf16.msra.mxu0 %v1609_v16 }
 0x8c4   :  { %1611 = vmatprep.subr.bf16.mxu0 %v1958_v0  ;;  %1557 = vmatprep.mubr.msk.f32.mxu0 %vm1959_vm0, %v1960_v1  ;;  %v1057_v1 = vld [vmem:[%s2489_s22 + $0x28] sm:$0xff] }
 0x8c5   :  { %v1615_v24 = vpack.c.bf16 %v1057_v1, %v1056_v23 }
 0x8c7   :  { %1317 = vrot.lane.b32.xlu0 %v1021_v61, %s1970_s23  ;;  %1613 = vmatpush3.bf16.msra.mxu0 %v1612_v22 }
 0x8c8   :  { %1614 = vmatprep.subr.bf16.mxu0 %v1958_v0 }
 0x8cb   :  { %1616 = vmatpush3.bf16.msra.mxu0 %v1615_v24 }
 0x8cc   :  { %1617 = vmatprep.subr.bf16.mxu0 %v1958_v0 }
 0x8cf   :  { %1619 = vmatpush3.bf16.msra.mxu0 %v1618_v27 }
 0x935   :  { %v1313_v45 = vpop.permute.xlu0 %1312 }
 0x939   :  { %v1318_v48 = vpop.permute.xlu0 %1317 }
 0x93a   :  { %v1332_v51 = vsel %vm1331_vm8, %v1330_v50, %v1318_v48 }
 0x93b   :  { %v1334_v55 = vsel %vm1333_vm10, %v1332_v51, %v2416_v15 }
 0x991   :  { %v1132_v28 = vpop.f32.mrb[8].mxu0 }
 0x992   :  { %v1533_v29 = vpop.f32.mrb[9].mxu0 }
 0x995   :  { %v1206_v31 = vpop.f32.mrb[10].mxu0 }
 0x996   :  { %v1207_v32 = vadd.f32 %v1206_v31, %v1132_v28  ;;  %v1540_v33 = vpop.f32.mrb[11].mxu0 }
 0x998   :  { %v1216_v0 = vadd.f32 %v1382_v30, %v1207_v32 }
 0x99a   :  { %v1217_v34 = vmax.f32 %v1216_v0, 0.0 }
 0x99c   :  { %1558 = vmatmul.mubr.msk.f32.vlgmr.msra.gmra.mrb[12].mxu0 %vm409_vm6, %v1217_v34 }
 0xa6f   :  { %v1293_v36 = vpop.f32.mrb[12].mxu0 }
 0xa70   :  { %v1294_v37 = vadd.f32 %v1383_v35, %v1293_v36  ;;  %v1559_v38 = vpop.f32.mrb[13].mxu0 }
 0xa72   :  { %v1297_v40 = vsub.f32 0.0, %v1294_v37  ;;  %1322 = vrot.lane.b32.xlu1 %v1294_v37, %s1961_s18 }
 0xa74   :  { %v1298_v41 = vmul.f32 1.442695, %v1297_v40 }
 0xa76   :  { %1662 = vpow2.f32 %v1298_v41 }
 0xa80   :  { %v1663_v42 = vpop.eup %1662 }
 0xa81   :  { %v1300_v43 = vadd.f32 1.0, %v1663_v42 }
 0xa83   :  { %1664 = vrcp.f32 %v1300_v43 }
 0xa8d   :  { %v1665_v44 = vpop.eup %1664 }
 0xa8e   :  { %v1315_v46 = vmul.f32 %v1665_v44, %v1313_v45 }
 0xa90   :  { %1326 = vrot.lane.b32.xlu1 %v1315_v46, %s1961_s18  ;;  %s2517_s18 = sld [smem:[#allocation38_spill]] }
 0xae4   :  { %v1323_v49 = vpop.permute.xlu1 %1322 }
 0xae5   :  { %v1335_v52 = vsel %vm243_vm1, %v2416_v15, %v1323_v49 }
 0xb02   :  { %v1327_v53 = vpop.permute.xlu1 %1326 }
 0xb03   :  { %v1337_v54 = vsel %vm1336_vm9, %v1335_v52, %v1327_v53 }
 0xb04   :  { %v1339_v56 = vsel %vm1338_vm11, %v1337_v54, 0.0 }
 0xb05   :  { %v1342_v57 = vcombine.low %v1334_v55, %v1339_v56 }
 0xb07   :  { %1385 = vst.sshfl [vmem:[%s2517_s18] sm:$0x33 pattern:$0x76325410] %v1342_v57 }
 0xb08   :  { %1356 = vsyncpa [#allocation3], 1 }
 0xb09   :  { %1357 = vsyncpa [#allocation5], 1 }
 0xb0a   :  { %1358 = vsyncpa [#allocation8], 1 }
 0xb0b   :  { %1359 = vsyncpa [#allocation11], 1 }
 0xb0c   :  { %1360 = vsyncpa [#allocation14], 1 }
 0xb0d   :  { %1361 = vsyncpa [#allocation17], 1 }
 0xb0e   :  { %1362 = vsyncpa [#allocation20], 1 }

</bundles_post_ra>
